<compile_context>
chip_gen: v7x
topology: tpu7x:2x2x1
jax: 0.10.0
libtpu: 0.0.40
codegen_flags: <defaults>
</compile_context>

<pallas_src>
import functools

import jax
import jax.numpy as jnp
import numpy as np
from jax.experimental import pallas as pl
from jax.experimental.pallas import tpu as pltpu

HIDDEN = 128


# ---------------------------------------------------------------------------
# Kernels
# ---------------------------------------------------------------------------
def _tail_store(h1_f32, w2_ref, b2_ref, w3_ref, b3_ref, o_ref):
    """Layers 2/3 (ReLU in f32, bf16 MXU operands) + narrow output store."""
    h1 = jnp.maximum(h1_f32, 0.0).astype(jnp.bfloat16)
    h2 = jnp.dot(h1, w2_ref[...], preferred_element_type=jnp.float32) + b2_ref[...]
    h2 = jnp.maximum(h2, 0.0).astype(jnp.bfloat16)
    out = jnp.dot(h2, w3_ref[...], preferred_element_type=jnp.float32) + b3_ref[...]
    o_ref[...] = out.astype(o_ref.dtype)  # (tile_b, action_dim): tiny writeback


def _mlp_kernel_fused(x_ref, w1_ref, b1_ref, w2_ref, b2_ref, w3_ref, b3_ref, o_ref):
    # in_dim fits in a single K tile: whole MLP in one pass.
    # x arrives f32 and is cast to bf16 on the VPU (kernel is DMA/store-bound,
    # the cast rides in otherwise-idle VALU slots).
    x = x_ref[...].astype(jnp.bfloat16)
    h1 = jnp.dot(x, w1_ref[...], preferred_element_type=jnp.float32) + b1_ref[...]
    _tail_store(h1, w2_ref, b2_ref, w3_ref, b3_ref, o_ref)


def _mlp_kernel_kgrid(x_ref, w1_ref, b1_ref, w2_ref, b2_ref, w3_ref, b3_ref,
                      o_ref, acc_ref):
    # Layer-1 reduction split over the trailing ("arbitrary") K grid axis.
    k = pl.program_id(1)

    @pl.when(k == 0)
    def _():
        acc_ref[...] = jnp.zeros_like(acc_ref)

    x = x_ref[...].astype(jnp.bfloat16)
    acc_ref[...] += jnp.dot(x, w1_ref[...], preferred_element_type=jnp.float32)

    @pl.when(k == pl.num_programs(1) - 1)
    def _():
        _tail_store(acc_ref[...] + b1_ref[...], w2_ref, b2_ref, w3_ref, b3_ref, o_ref)


# ---------------------------------------------------------------------------
# Tiling heuristics (generation aware)
# ---------------------------------------------------------------------------
def _round_up(v, m):
    return -(-v // m) * m


def _vmem_budget_bytes():
    """Per-generation tiling budget: ~75% of physical VMEM, rest is headroom."""
    try:
        cap = int(pltpu.get_tpu_info().vmem_capacity_bytes)
    except Exception:  # pragma: no cover - conservative fallback (v7x size)
        cap = 64 << 20
    return (cap * 3) // 4


def _max_tile_k(tile_b, in_dim, out_dim, budget):
    """Largest layer-1 K tile (multiple of 128, or full in_dim) that fits `budget`."""
    fixed = (
        2 * (HIDDEN * HIDDEN * 2 + HIDDEN * out_dim * 2 + 3 * HIDDEN * 4)  # w2/w3/biases
        + 2 * tile_b * out_dim * 4          # output tile (f32, double-buffered)
        + tile_b * HIDDEN * 4               # layer-1 f32 accumulator scratch
        + 4 * tile_b * HIDDEN * 4           # h1/h2 temporaries headroom
    )
    if fixed >= budget:
        return None
    per_k = 2 * tile_b * 4 + 2 * HIDDEN * 2  # x (f32, 2x buffered) + w1 strip (bf16, 2x)
    max_k = (budget - fixed) // per_k
    if max_k >= in_dim:
        return in_dim                        # single K tile, no padding needed
    if max_k < 128:
        return None
    max_k = (max_k // 128) * 128
    # Balance: smallest 128-multiple giving the same K-step count (less zero-pad).
    n_k = -(-in_dim // max_k)
    return min(max_k, _round_up(-(-in_dim // n_k), 128))


def _choose_tiles(batch, in_dim, out_dim, budget):
    """Pick (tile_b, tile_k) fitting the VMEM budget.

    Big batch tiles amortize the ~0.35 us per-grid-step overhead, but once
    batch >= 512 the tile is capped at ceil(batch/2) so there are >= 2 grid
    steps for v7x's two TensorCores (no-op on v5e/v6e).
    """
    if batch >= 512:
        half = -(-batch // 2)
        tile_b = min(2048, max(256, (half // 256) * 256))
    else:
        tile_b = max(8, _round_up(batch, 8))
    while True:
        tile_k = _max_tile_k(tile_b, in_dim, out_dim, budget)
        if tile_k is not None:
            return tile_b, tile_k
        if tile_b <= 8:
            return 8, min(in_dim, 128)  # last resort; should not happen in practice
        tile_b = max(8, tile_b // 2)


# ---------------------------------------------------------------------------
# Params
# ---------------------------------------------------------------------------
def init_basenet_params(key, state_shape, action_shape):
    """PyTorch-like init: W ~ U(-1/sqrt(fan_in), +), b 1-D (fan_out,)."""
    in_dim = int(np.prod(state_shape))
    dims = [(in_dim, HIDDEN), (HIDDEN, HIDDEN), (HIDDEN, int(action_shape))]
    params = []
    for fan_in, fan_out in dims:
        key, kw, kb = jax.random.split(key, 3)
        bound = 1.0 / np.sqrt(fan_in)
        w = jax.random.uniform(kw, (fan_in, fan_out), jnp.float32, -bound, bound)
        b = jax.random.uniform(kb, (fan_out,), jnp.float32, -bound, bound)
        params += [w, b]
    return tuple(params)


def prepare_basenet_params(params):
    """One-time prep (do NOT call per forward): bf16 weights, (1, N) f32 biases."""
    w1, b1, w2, b2, w3, b3 = params
    prep_w = lambda w: jnp.asarray(w, jnp.bfloat16)
    prep_b = lambda b: jnp.asarray(b, jnp.float32).reshape(1, -1)
    return (prep_w(w1), prep_b(b1), prep_w(w2), prep_b(b2), prep_w(w3), prep_b(b3))


# ---------------------------------------------------------------------------
# Forward
# ---------------------------------------------------------------------------
def basenet_forward(s, params, state=None, info=None, *, _debug_max_tile_k=None):
    """Pallas implementation of BaseNet.forward.  Returns (action, state)."""
    s = jnp.asarray(s)
    if s.dtype != jnp.float32:
        s = s.astype(jnp.float32)
    batch = s.shape[0]
    x = s.reshape(batch, -1)  # glue reshape (s.view(batch, -1)) in plain JAX
    in_dim = x.shape[1]

    w1, b1, w2, b2, w3, b3 = params
    # Accept raw (f32 weights / 1-D bias) params too; prefer pre-prepared ones.
    if w1.dtype != jnp.bfloat16 or getattr(b1, "ndim", 1) != 2:
        w1, b1, w2, b2, w3, b3 = prepare_basenet_params((w1, b1, w2, b2, w3, b3))
    action_dim = w3.shape[1]

    budget = _vmem_budget_bytes()
    tile_b, tile_k = _choose_tiles(batch, in_dim, action_dim, budget)
    if _debug_max_tile_k is not None:
        tile_k = min(tile_k, _debug_max_tile_k)

    padded_batch = pl.cdiv(batch, tile_b) * tile_b
    n_k = pl.cdiv(in_dim, tile_k)
    padded_k = n_k * tile_k

    pad_b = padded_batch - batch
    pad_k = padded_k - in_dim
    if pad_b or pad_k:
        x = jnp.pad(x, ((0, pad_b), (0, pad_k)))
    if pad_k:
        # Zero rows contribute nothing to the layer-1 matmul (large-in_dim path only).
        w1 = jnp.pad(w1, ((0, pad_k), (0, 0)))

    grid = (padded_batch // tile_b, n_k)

    in_specs = [
        pl.BlockSpec((tile_b, tile_k), lambda i, k: (i, k)),      # x (f32)
        pl.BlockSpec((tile_k, HIDDEN), lambda i, k: (k, 0)),      # w1 strip (bf16)
        pl.BlockSpec((1, HIDDEN), lambda i, k: (0, 0)),           # b1 (resident)
        pl.BlockSpec((HIDDEN, HIDDEN), lambda i, k: (0, 0)),      # w2 (resident)
        pl.BlockSpec((1, HIDDEN), lambda i, k: (0, 0)),           # b2 (resident)
        pl.BlockSpec((HIDDEN, action_dim), lambda i, k: (0, 0)),  # w3 (resident)
        pl.BlockSpec((1, action_dim), lambda i, k: (0, 0)),       # b3 (resident)
    ]
    out_spec = pl.BlockSpec((tile_b, action_dim), lambda i, k: (i, 0))

    if n_k == 1:
        kernel = _mlp_kernel_fused
        scratch_shapes = []
    else:
        kernel = _mlp_kernel_kgrid
        scratch_shapes = [pltpu.VMEM((tile_b, HIDDEN), jnp.float32)]

    out = pl.pallas_call(
        kernel,
        out_shape=jax.ShapeDtypeStruct((padded_batch, action_dim), jnp.float32),
        grid=grid,
        in_specs=in_specs,
        out_specs=out_spec,
        scratch_shapes=scratch_shapes,
        compiler_params=pltpu.CompilerParams(
            dimension_semantics=("parallel", "arbitrary"),
            vmem_limit_bytes=int(budget),  # same budget used to derive the tiles
        ),
    )(x, w1, b1, w2, b2, w3, b3)

    action = out if padded_batch == batch else out[:batch]
    return action, state


# ---------------------------------------------------------------------------
# Self-test
# ---------------------------------------------------------------------------
def _ref_forward(x, params):
    w1, b1, w2, b2, w3, b3 = params
    h = jnp.maximum(x @ w1 + b1[None, :], 0.0)
    h = jnp.maximum(h @ w2 + b2[None, :], 0.0)
    return h @ w3 + b3[None, :]


if __name__ == "__main__":
    key = jax.random.PRNGKey(0)
    state_shape = (4, 4)   # flattened input dim = 16
    action_shape = 4
    batch = 2

    key, k_in = jax.random.split(key)
    params = init_basenet_params(key, state_shape, action_shape)
    prepared = prepare_basenet_params(params)  # hoisted out of the per-call path
    s = jax.random.normal(k_in, (batch,) + state_shape, dtype=jnp.float32)

    action, st = basenet_forward(s, prepared, state=None)
    action = jax.block_until_ready(action)
    assert action.shape == (batch, action_shape)
    assert st is None
    ref = _ref_forward(s.reshape(batch, -1), params)
    assert jnp.allclose(action, ref, atol=5e-2, rtol=5e-2)

    # Exercise the K-grid (split layer-1 reduction) path at small shapes.
    key, kp2, ki2 = jax.random.split(key, 3)
    in_dim2 = 512
    params2 = init_basenet_params(kp2, (in_dim2,), action_shape)
    prepared2 = prepare_basenet_params(params2)
    s2 = jax.random.normal(ki2, (batch, in_dim2), dtype=jnp.float32)
    action2, _ = basenet_forward(s2, prepared2, _debug_max_tile_k=128)
    action2 = jax.block_until_ready(action2)
    ref2 = _ref_forward(s2, params2)
    assert jnp.allclose(action2, ref2, atol=5e-2, rtol=5e-2)

    print("KERNEL_OK")
</pallas_src>

<mosaic_0001>
module attributes {stable_mosaic.version = 11 : i64} {
  func.func @_mlp_kernel_fused(%arg0: i32, %arg1: i32, %arg2: memref<8x16xf32, #tpu.memory_space<vmem>>, %arg3: memref<16x128xbf16, #tpu.memory_space<vmem>>, %arg4: memref<1x128xf32, #tpu.memory_space<vmem>>, %arg5: memref<128x128xbf16, #tpu.memory_space<vmem>>, %arg6: memref<1x128xf32, #tpu.memory_space<vmem>>, %arg7: memref<128x4xbf16, #tpu.memory_space<vmem>>, %arg8: memref<1x4xf32, #tpu.memory_space<vmem>>, %arg9: memref<8x4xf32, #tpu.memory_space<vmem>>) attributes {dimension_semantics = [#tpu.dimension_semantics<parallel>, #tpu.dimension_semantics<arbitrary>], iteration_bounds = array<i64: 1, 1>, scalar_prefetch = 0 : i64, scratch_operands = 0 : i64, tpu.core_type = #tpu.core_type<tc>, window_params = [{transform_indices = @transform_0, window_bounds = array<i64: 8, 16>}, {transform_indices = @transform_1, window_bounds = array<i64: 16, 128>}, {pipeline_mode = #tpu.pipeline_mode<synchronous>, transform_indices = @transform_2, window_bounds = array<i64: 1, 128>}, {pipeline_mode = #tpu.pipeline_mode<synchronous>, transform_indices = @transform_3, window_bounds = array<i64: 128, 128>}, {pipeline_mode = #tpu.pipeline_mode<synchronous>, transform_indices = @transform_4, window_bounds = array<i64: 1, 128>}, {pipeline_mode = #tpu.pipeline_mode<synchronous>, transform_indices = @transform_5, window_bounds = array<i64: 128, 4>}, {pipeline_mode = #tpu.pipeline_mode<synchronous>, transform_indices = @transform_6, window_bounds = array<i64: 1, 4>}, {transform_indices = @transform_7, window_bounds = array<i64: 8, 4>}]} {
    %c0 = arith.constant 0 : index
    %c0_0 = arith.constant 0 : index
    %0 = vector.load %arg2[%c0, %c0_0] : memref<8x16xf32, #tpu.memory_space<vmem>>, vector<8x16xf32>
    %1 = arith.truncf %0 : vector<8x16xf32> to vector<8x16xbf16>
    %c0_1 = arith.constant 0 : index
    %c0_2 = arith.constant 0 : index
    %2 = vector.load %arg3[%c0_1, %c0_2] : memref<16x128xbf16, #tpu.memory_space<vmem>>, vector<16x128xbf16>
    %cst = arith.constant dense<0.000000e+00> : vector<8x128xf32>
    %3 = tpu.matmul %1, %2, %cst {dimension_numbers = #tpu.dot_dimension_numbers<[1], [0], [0], [1], [0, 0, 1, 1], [], []>} : vector<8x16xbf16>, vector<16x128xbf16>, vector<8x128xf32> -> vector<8x128xf32>
    %c0_3 = arith.constant 0 : index
    %c0_4 = arith.constant 0 : index
    %4 = vector.load %arg4[%c0_3, %c0_4] : memref<1x128xf32, #tpu.memory_space<vmem>>, vector<1x128xf32>
    %5 = vector.broadcast %4 : vector<1x128xf32> to vector<8x128xf32>
    %6 = arith.addf %3, %5 : vector<8x128xf32>
    %cst_5 = arith.constant 0.000000e+00 : f32
    %7 = vector.broadcast %cst_5 : f32 to vector<8x128xf32>
    %8 = arith.maximumf %6, %7 : vector<8x128xf32>
    %9 = arith.truncf %8 : vector<8x128xf32> to vector<8x128xbf16>
    %c0_6 = arith.constant 0 : index
    %c0_7 = arith.constant 0 : index
    %10 = vector.load %arg5[%c0_6, %c0_7] : memref<128x128xbf16, #tpu.memory_space<vmem>>, vector<128x128xbf16>
    %cst_8 = arith.constant dense<0.000000e+00> : vector<8x128xf32>
    %11 = tpu.matmul %9, %10, %cst_8 {dimension_numbers = #tpu.dot_dimension_numbers<[1], [0], [0], [1], [0, 0, 1, 1], [], []>} : vector<8x128xbf16>, vector<128x128xbf16>, vector<8x128xf32> -> vector<8x128xf32>
    %c0_9 = arith.constant 0 : index
    %c0_10 = arith.constant 0 : index
    %12 = vector.load %arg6[%c0_9, %c0_10] : memref<1x128xf32, #tpu.memory_space<vmem>>, vector<1x128xf32>
    %13 = vector.broadcast %12 : vector<1x128xf32> to vector<8x128xf32>
    %14 = arith.addf %11, %13 : vector<8x128xf32>
    %cst_11 = arith.constant 0.000000e+00 : f32
    %15 = vector.broadcast %cst_11 : f32 to vector<8x128xf32>
    %16 = arith.maximumf %14, %15 : vector<8x128xf32>
    %17 = arith.truncf %16 : vector<8x128xf32> to vector<8x128xbf16>
    %c0_12 = arith.constant 0 : index
    %c0_13 = arith.constant 0 : index
    %18 = vector.load %arg7[%c0_12, %c0_13] : memref<128x4xbf16, #tpu.memory_space<vmem>>, vector<128x4xbf16>
    %cst_14 = arith.constant dense<0.000000e+00> : vector<8x4xf32>
    %19 = tpu.matmul %17, %18, %cst_14 {dimension_numbers = #tpu.dot_dimension_numbers<[1], [0], [0], [1], [0, 0, 1, 1], [], []>} : vector<8x128xbf16>, vector<128x4xbf16>, vector<8x4xf32> -> vector<8x4xf32>
    %c0_15 = arith.constant 0 : index
    %c0_16 = arith.constant 0 : index
    %20 = vector.load %arg8[%c0_15, %c0_16] : memref<1x4xf32, #tpu.memory_space<vmem>>, vector<1x4xf32>
    %21 = vector.broadcast %20 : vector<1x4xf32> to vector<8x4xf32>
    %22 = arith.addf %19, %21 : vector<8x4xf32>
    %c0_17 = arith.constant 0 : index
    %c0_18 = arith.constant 0 : index
    %23 = vector.load %arg9[%c0_17, %c0_18] : memref<8x4xf32, #tpu.memory_space<vmem>>, vector<8x4xf32>
    tpu.vector_store %arg9[%c0_17, %c0_18], %22 {strides = array<i32>} : memref<8x4xf32, #tpu.memory_space<vmem>>, vector<8x4xf32>,
    return
  }
  func.func @transform_0(%arg0: i32, %arg1: i32) -> (i32, i32) {
    %c0_i32 = arith.constant 0 : i32
    return %arg0, %arg1 : i32, i32
  }
  func.func @transform_1(%arg0: i32, %arg1: i32) -> (i32, i32) {
    %c0_i32 = arith.constant 0 : i32
    %c0_i32_0 = arith.constant 0 : i32
    return %arg1, %c0_i32 : i32, i32
  }
  func.func @transform_2(%arg0: i32, %arg1: i32) -> (i32, i32) {
    %c0_i32 = arith.constant 0 : i32
    %c0_i32_0 = arith.constant 0 : i32
    %c0_i32_1 = arith.constant 0 : i32
    return %c0_i32, %c0_i32_0 : i32, i32
  }
  func.func @transform_3(%arg0: i32, %arg1: i32) -> (i32, i32) {
    %c0_i32 = arith.constant 0 : i32
    %c0_i32_0 = arith.constant 0 : i32
    %c0_i32_1 = arith.constant 0 : i32
    return %c0_i32, %c0_i32_0 : i32, i32
  }
  func.func @transform_4(%arg0: i32, %arg1: i32) -> (i32, i32) {
    %c0_i32 = arith.constant 0 : i32
    %c0_i32_0 = arith.constant 0 : i32
    %c0_i32_1 = arith.constant 0 : i32
    return %c0_i32, %c0_i32_0 : i32, i32
  }
  func.func @transform_5(%arg0: i32, %arg1: i32) -> (i32, i32) {
    %c0_i32 = arith.constant 0 : i32
    %c0_i32_0 = arith.constant 0 : i32
    %c0_i32_1 = arith.constant 0 : i32
    return %c0_i32, %c0_i32_0 : i32, i32
  }
  func.func @transform_6(%arg0: i32, %arg1: i32) -> (i32, i32) {
    %c0_i32 = arith.constant 0 : i32
    %c0_i32_0 = arith.constant 0 : i32
    %c0_i32_1 = arith.constant 0 : i32
    return %c0_i32, %c0_i32_0 : i32, i32
  }
  func.func @transform_7(%arg0: i32, %arg1: i32) -> (i32, i32) {
    %c0_i32 = arith.constant 0 : i32
    %c0_i32_0 = arith.constant 0 : i32
    return %arg0, %c0_i32 : i32, i32
  }
}

</mosaic_0001>

<bundles_post_ra>
// kernel: tpu_custom_call.1
= control target key start
LH: loop header
LB: loop body
LE: loop exit
PB: predicated region body
PF: predicated region fallthrough
CT: control target
= control target key end

     0   :  { %12 = vsyncpa [#allocation3], 0  ;;  %s468_s24 = smov [#allocation2]   ;;  %s608_s0 = inlined_call_operand.vmem [shape: f32[8,16], index: 0, kind: input, shape index: {}]   ;;  %s609_s1 = inlined_call_operand.hbm [shape: bf16[16,128], index: 1, kind: input, shape index: {}]   ;;  %s610_s2 = inlined_call_operand.vmem [shape: f32[1,128], index: 2, kind: input, shape index: {}]   ;;  %s611_s3 = inlined_call_operand.vmem [shape: bf16[128,128], index: 3, kind: input, shape index: {}]   ;;  %s612_s4 = inlined_call_operand.vmem [shape: f32[1,128], index: 4, kind: input, shape index: {}]   ;;  %s613_s5 = inlined_call_operand.vmem [shape: bf16[128,4], index: 5, kind: input, shape index: {}]   ;;  %s614_s6 = inlined_call_operand.vmem [shape: f32[1,4], index: 6, kind: input, shape index: {}]   ;;  %s615_s7 = inlined_call_operand.vmem [shape: f32[8,4], index: 7, kind: output, shape index: {}]  }
   0x1   :  { %s20_s25 = sshll.u32 %s468_s24, 4  ;;  %s444_s28 = scalar_lea.hbm %s609_s1, 128  ;;  %s21_s25 = int_to_ptr.vmem [resolvable:$true] %s20_s25 }
   0x2   :  { %p445_p0 = scmp.ne.s32.totalorder %s609_s1, %s444_s28  ;;  %p448_p1 = scmp.lt.u32.totalorder %s444_s28, %s609_s1 }
   0x4   :  { %p450_p2 = pnand %p448_p1, %p445_p0 }
   0x6   :  { %453 = shalt.err (!%p450_p2)
}
   0x7   :  { %s454_s10 = scalar_lea.vmem %s21_s25, 128  ;;  %p459_p4 = scmp.lt.s32.totalorder %s21_s25, %s21_s25 }
   0x8   :  { %p455_p3 = scmp.ne.s32.totalorder %s21_s25, %s454_s10  ;;  %p460_p5 = scmp.lt.s32.totalorder %s454_s10, %s454_s10 }
   0xa   :  { %p461_p6 = por %p460_p5, %p459_p4 }
   0xc   :  { %p462_p7 = pnand %p461_p6, %p455_p3 }
   0xe   :  { %465 = shalt.err (!%p462_p7)
}
   0xf   :  { %s469_s11 = smov 64   ;;  %s470_s12 = smov 4  }
  0x10   :  { %26 = dma.hbm_to_vmem [thread:$0]  %s609_s1, 128, %s21_s25, [#allocation3], %s469_s11, %s469_s11, %s470_s12  }
  0x11   :  { %466 = dma.done.wait [#allocation3], 128  }
  0x12   :  { %467 = vsyncadd [#allocation3], 4294967168  ;;  %v471_v0 = vmov 0.0   ;;  %vm472_vm0 = vmmov 0   ;;  %v427_v1 = vld [vmem:[#allocation2] sm:$0xff]   ;;  %vm58_vm1 = vcmask 130048  }
  0x13   :  { %376 = vmatprep.subr.bf16.mxu0 %v471_v0  ;;  %378 = vmatprep.mubr.msk.bf16.mxu0 %vm472_vm0, %v471_v0  ;;  %v41_v2 = vld [vmem:[%s608_s0] sm:$0xff]  ;;  %v429_v5 = vld [vmem:[%s611_s3 + $0x8] sm:$0xff]   ;;  %v430_v6 = vld [vmem:[%s611_s3 + $0x10] sm:$0xff]   ;;  %vm328_vm2 = vcmask 31744  }
  0x14   :  { %382 = vmatprep.subr.bf16.mxu1 %v471_v0  ;;  %398 = vmatprep.mubr.msk.bf16.mxu1 %vm472_vm0, %v471_v0  ;;  %v42_v3 = vpack.c.bf16 %v41_v2, %v41_v2  ;;  %v428_v4 = vld [vmem:[%s611_s3] sm:$0xff]   ;;  %v431_v7 = vld [vmem:[%s611_s3 + $0x18] sm:$0xff]   ;;  %v433_v9 = vld [vmem:[%s611_s3 + $0x28] sm:$0xff]  }
  0x15   :  { %377 = vmatpush3.bf16.msra.mxu0 %v427_v1  ;;  %383 = vmatpush3.bf16.msra.mxu1 %v428_v4  ;;  %v432_v8 = vld [vmem:[%s611_s3 + $0x20] sm:$0xff]   ;;  %v434_v10 = vld [vmem:[%s611_s3 + $0x30] sm:$0xff]   ;;  %v435_v11 = vld [vmem:[%s611_s3 + $0x38] sm:$0xff]  }
  0x16   :  { %402 = vmatprep.subr.bf16.mxu0 %v471_v0  ;;  %384 = vmatprep.subr.bf16.mxu1 %v471_v0  ;;  %v436_v12 = vld [vmem:[%s613_s5] sm:$0xff]   ;;  %v437_v13 = vld [vmem:[%s613_s5 + $0x8] sm:$0xff]   ;;  %v438_v14 = vld [vmem:[%s613_s5 + $0x10] sm:$0xff]  }
  0x17   :  { %v439_v15 = vld [vmem:[%s613_s5 + $0x18] sm:$0xff]   ;;  %v440_v16 = vld [vmem:[%s613_s5 + $0x20] sm:$0xff]   ;;  %v441_v17 = vld [vmem:[%s613_s5 + $0x28] sm:$0xff]  }
  0x18   :  { %379 = vmatmul.mubr.msk.bf16.vlgmr.msra.gmra.mrb[0].mxu0 %vm58_vm1, %v42_v3  ;;  %v335_v18 = vld [vmem:[%s610_s2] ss:$0 sm:$0xff]  ;;  %v442_v26 = vld [vmem:[%s613_s5 + $0x30] sm:$0xff]   ;;  %v443_v27 = vld [vmem:[%s613_s5 + $0x38] sm:$0xff]  }
  0x19   :  { %418 = vmatprep.mubr.msk.bf16.mxu0 %vm472_vm0, %v471_v0  ;;  %385 = vmatpush3.bf16.msra.mxu1 %v429_v5  ;;  %v338_v28 = vld [vmem:[%s612_s4] ss:$0 sm:$0xff] }
  0x1a   :  { %386 = vmatprep.subr.bf16.mxu1 %v471_v0  ;;  %403 = vmatpush3.bf16.msra.mxu0 %v436_v12  ;;  %v347_v36 = vld [vmem:[%s614_s6] ss:$0 sm:$0xff] }
  0x1b   :  { %404 = vmatprep.subr.bf16.mxu0 %v471_v0 }
  0x1d   :  { %387 = vmatpush3.bf16.msra.mxu1 %v430_v6 }
  0x1e   :  { %388 = vmatprep.subr.bf16.mxu1 %v471_v0  ;;  %405 = vmatpush3.bf16.msra.mxu0 %v437_v13 }
  0x1f   :  { %406 = vmatprep.subr.bf16.mxu0 %v471_v0 }
  0x21   :  { %389 = vmatpush3.bf16.msra.mxu1 %v431_v7 }
  0x22   :  { %390 = vmatprep.subr.bf16.mxu1 %v471_v0  ;;  %407 = vmatpush3.bf16.msra.mxu0 %v438_v14 }
  0x23   :  { %408 = vmatprep.subr.bf16.mxu0 %v471_v0 }
  0x25   :  { %391 = vmatpush3.bf16.msra.mxu1 %v432_v8 }
  0x26   :  { %392 = vmatprep.subr.bf16.mxu1 %v471_v0  ;;  %409 = vmatpush3.bf16.msra.mxu0 %v439_v15 }
  0x27   :  { %410 = vmatprep.subr.bf16.mxu0 %v471_v0 }
  0x29   :  { %393 = vmatpush3.bf16.msra.mxu1 %v433_v9 }
  0x2a   :  { %394 = vmatprep.subr.bf16.mxu1 %v471_v0  ;;  %411 = vmatpush3.bf16.msra.mxu0 %v440_v16 }
  0x2b   :  { %412 = vmatprep.subr.bf16.mxu0 %v471_v0 }
  0x2d   :  { %395 = vmatpush3.bf16.msra.mxu1 %v434_v10 }
  0x2e   :  { %396 = vmatprep.subr.bf16.mxu1 %v471_v0  ;;  %413 = vmatpush3.bf16.msra.mxu0 %v441_v17 }
  0x2f   :  { %414 = vmatprep.subr.bf16.mxu0 %v471_v0 }
  0x31   :  { %397 = vmatpush3.bf16.msra.mxu1 %v435_v11 }
  0x32   :  { %415 = vmatpush3.bf16.msra.mxu0 %v442_v26 }
  0x33   :  { %416 = vmatprep.subr.bf16.mxu0 %v471_v0 }
  0x36   :  { %417 = vmatpush3.bf16.msra.mxu0 %v443_v27 }
  0xeb   :  { %v96_v19 = vpop.f32.mrb[0].mxu0 }
  0xec   :  { %v97_v20 = vadd.f32 %v335_v18, %v96_v19  ;;  %v380_v21 = vpop.f32.mrb[1].mxu0 }
  0xed   :  { %v99_v22 = vpop.f32.mrb[2].mxu0 }
  0xee   :  { %v102_v23 = vmax.f32 %v97_v20, 0.0  ;;  %v381_v24 = vpop.f32.mrb[3].mxu0 }
  0xf0   :  { %v103_v25 = vpack.c.bf16 %v102_v23, %v102_v23 }
  0xf2   :  { %399 = vmatmul.mubr.bf16.vlgmr.msra.gmra.mrb[0].mxu1 %v103_v25 }
 0x1c5   :  { %v209_v29 = vpop.f32.mrb[0].mxu1 }
 0x1c6   :  { %v210_v30 = vadd.f32 %v338_v28, %v209_v29  ;;  %v400_v31 = vpop.f32.mrb[1].mxu1 }
 0x1c7   :  { %v212_v32 = vpop.f32.mrb[2].mxu1 }
 0x1c8   :  { %v215_v33 = vmax.f32 %v210_v30, 0.0  ;;  %v401_v34 = vpop.f32.mrb[3].mxu1 }
 0x1ca   :  { %v216_v35 = vpack.c.bf16 %v215_v33, %v215_v33 }
 0x1cc   :  { %419 = vmatmul.mubr.bf16.vlgmr.msra.gmra.mrb[4].mxu0 %v216_v35 }
 0x29f   :  { %v322_v37 = vpop.f32.mrb[4].mxu0 }
 0x2a0   :  { %v323_v38 = vadd.f32 %v347_v36, %v322_v37  ;;  %v420_v39 = vpop.f32.mrb[5].mxu0 }
 0x2a1   :  { %v325_v40 = vpop.f32.mrb[6].mxu0 }
 0x2a2   :  { %329 = vst.msk [vmem:[%s615_s7] sm:$0xff] %vm328_vm2, %v323_v38  ;;  %v421_v41 = vpop.f32.mrb[7].mxu0 }
 0x2a3   :  { %334 = vsyncpa [#allocation3], 1 }

</bundles_post_ra>
